<compile_context>
chip_gen: v7x
topology: tpu7x:2x2x1
jax: 0.10.0
libtpu: 0.0.40
codegen_flags: <defaults>
</compile_context>

<pallas_src>
import functools

import jax
import jax.numpy as jnp
from jax.experimental import pallas as pl
from jax.experimental.pallas import tpu as pltpu

ACT_SIZE = 3          # act_fun.get_size()
_LANE = 128
_K_PACK = 16          # pad K to a multiple of 16 (bf16 sublane packing)


def _round_up(n, m):
    return ((n + m - 1) // m) * m


def _gen_config():
    """Per-TPU-generation knobs: basis dtype, VMEM tile budget, scoped limit."""
    kind = ""
    try:
        kind = jax.devices()[0].device_kind.lower()
    except Exception:
        pass
    if ("v5" in kind) or ("v4" in kind) or ("v3" in kind):
        # No native bf16 VPU/EUP: keep basis math in f32.  128 MiB VMEM but a
        # 16 MiB default scoped limit, so raise vmem_limit_bytes explicitly.
        return dict(basis_dtype=jnp.float32, vmem_budget=64 << 20,
                    vmem_limit=96 << 20, min_steps=2)
    if "v7" in kind:
        # 64 MiB VMEM per TC, 2 TCs per chip: tighter budget, more grid steps.
        return dict(basis_dtype=jnp.bfloat16, vmem_budget=28 << 20,
                    vmem_limit=48 << 20, min_steps=4)
    # v6e and unknown default: native bf16 VPU/EUP, 128 MiB VMEM.
    return dict(basis_dtype=jnp.bfloat16, vmem_budget=64 << 20,
                vmem_limit=100 << 20, min_steps=2)


def _pick_lane_tile(l, batch, *, kp, o, basis_bytes, vmem_budget, min_steps,
                    max_tile=2048):
    """Largest multiple-of-128 lane tile that fits the per-generation VMEM
    budget, capped at max_tile, shrunk (best effort) until there are at least
    `min_steps` total grid steps for DMA/compute overlap + megacore sharding."""
    bytes_per_lane = (
        2 * kp * 2            # double-buffered u tile (bf16)
        + 2 * o * 4           # double-buffered output tile (f32)
        + 3 * kp * basis_bytes  # silu / u^2 / u^3 temps
        + kp * 4              # headroom: f32 upcast (v5e path) / staging copies
    )
    fixed = 2 * (ACT_SIZE + 1) * o * kp * 2   # resident stacked weights (x2 buf)
    avail = max(vmem_budget - fixed, 1 << 20)
    t = (avail // bytes_per_lane) // _LANE * _LANE
    t = max(_LANE, min(t, max_tile, _round_up(l, _LANE)))
    while t > _LANE and batch * pl.cdiv(l, t) < min_steps:
        t -= _LANE
    return t


# ----------------------------------------------------------------------------
# Pallas kernel
# ----------------------------------------------------------------------------
def _kan_conv_kernel(u_ref, w_ref, o_ref, *, basis_dtype):
    """One (batch, lane-tile) output block.

    u_ref : (1, Kp, LT)  bf16 unfolded input patches
    w_ref : (4, O, Kp)   bf16 stacked weights [w_b | c0*w_s | c1*w_s | c2*w_s]
    o_ref : (1, O, LT)   f32 output block
    """
    u = u_ref[0]                                   # (Kp, LT) bf16
    ub = u.astype(basis_dtype)                     # bf16 (v6e/v7x) / f32 (v5e)
    silu = ub * jax.nn.sigmoid(ub)                 # residual path (EUP + VPU)
    u2 = ub * ub
    u3 = u2 * ub

    # Four accumulating MXU dots -- no basis concat, no extra copies.
    acc = jnp.dot(w_ref[0], silu.astype(jnp.bfloat16),
                  preferred_element_type=jnp.float32)
    acc += jnp.dot(w_ref[1], u, preferred_element_type=jnp.float32)
    acc += jnp.dot(w_ref[2], u2.astype(jnp.bfloat16),
                   preferred_element_type=jnp.float32)
    acc += jnp.dot(w_ref[3], u3.astype(jnp.bfloat16),
                   preferred_element_type=jnp.float32)
    o_ref[0] = acc.astype(o_ref.dtype)


def _kan_conv_matmul(u, w_all, *, l_tile, basis_dtype, vmem_limit):
    """u: (B, Kp, Lp) bf16;  w_all: (4, O, Kp) bf16  ->  (B, O, Lp) f32."""
    b, kp, lp = u.shape
    na, o, _ = w_all.shape
    assert lp % l_tile == 0

    kernel = functools.partial(_kan_conv_kernel, basis_dtype=basis_dtype)
    return pl.pallas_call(
        kernel,
        out_shape=jax.ShapeDtypeStruct((b, o, lp), jnp.float32),
        grid_spec=pltpu.PrefetchScalarGridSpec(
            num_scalar_prefetch=0,
            grid=(b, lp // l_tile),
            in_specs=[
                # unfolded input: one (batch, lane-tile) block per grid step
                pl.BlockSpec((1, kp, l_tile), lambda bi, li: (bi, 0, li)),
                # stacked weights: resident across the whole grid
                # TODO(synk): single-buffer via pipeline_mode=pl.Buffered(1)
                # once supported to reclaim one weight-copy of VMEM.
                pl.BlockSpec((na, o, kp), lambda bi, li: (0, 0, 0)),
            ],
            out_specs=pl.BlockSpec((1, o, l_tile), lambda bi, li: (bi, 0, li)),
        ),
        compiler_params=pltpu.CompilerParams(
            dimension_semantics=("parallel", "parallel"),
            vmem_limit_bytes=vmem_limit,
        ),
    )(u, w_all)


# ----------------------------------------------------------------------------
# Glue: im2col (F.unfold equivalent) and the module wrapper
# ----------------------------------------------------------------------------
def unfold_nchw(x, kernel_size, stride, padding):
    """JAX equivalent of torch.nn.functional.unfold for NCHW input.

    Returns (B, C*k*k, Ho*Wo) with PyTorch's (C slowest, then kh, kw) ordering
    along the K axis.  Runs in the dtype of x (bf16 on the kernel path).
    """
    B, C, H, W = x.shape
    k = kernel_size
    xp = jnp.pad(x, ((0, 0), (0, 0), (padding, padding), (padding, padding)))
    Ho = (H - k + 2 * padding) // stride + 1
    Wo = (W - k + 2 * padding) // stride + 1
    patches = []
    for ki in range(k):
        for kj in range(k):
            patches.append(
                xp[:, :, ki:ki + Ho * stride:stride, kj:kj + Wo * stride:stride]
            )
    p = jnp.stack(patches, axis=2)              # (B, C, k*k, Ho, Wo)
    return p.reshape(B, C * k * k, Ho * Wo), Ho, Wo


class Conv2dKanPallas:
    """JAX/Pallas port of the PyTorch Conv2dKan module."""

    def __init__(self, in_channels, out_channels, kernel_size, stride, padding,
                 key):
        self.in_channels = in_channels
        self.out_channels = out_channels
        self.kernel_size = kernel_size
        self.stride = stride
        self.padding = padding
        self.cfg = _gen_config()

        K = in_channels * kernel_size * kernel_size
        self.K = K
        self.k_pad = _round_up(K, _K_PACK)
        k_wb, k_c = jax.random.split(key)

        # xavier_normal_(w_b, gain=0.001): std = gain * sqrt(2 / (fan_in+fan_out))
        std_wb = 0.001 * (2.0 / (out_channels + K)) ** 0.5
        self.w_b = std_wb * jax.random.normal(k_wb, (out_channels, K), jnp.float32)
        # w_s stays at its init value: ones
        self.w_s = jnp.ones((out_channels, K), jnp.float32)
        # normal_(c, 0, 0.001)
        self.c = 0.001 * jax.random.normal(
            k_c, (ACT_SIZE, out_channels, K), jnp.float32)

        # Pre-stack the fused weight [w_b, c0*w_s, c1*w_s, c2*w_s] along a new
        # leading axis, zero-padding K -> k_pad.  Small + resident, bf16 for
        # the MXU (fold is done in f32 first).
        blocks = [self.w_b] + [self.c[a] * self.w_s for a in range(ACT_SIZE)]
        blocks = [jnp.pad(b, ((0, 0), (0, self.k_pad - K))) for b in blocks]
        self.w_all = jnp.stack(blocks, axis=0).astype(jnp.bfloat16)  # (4, O, Kp)

    @functools.partial(jax.jit, static_argnums=0)
    def __call__(self, x):
        B = x.shape[0]
        assert x.ndim == 4 and x.shape[1] == self.in_channels

        # im2col in bf16 (half the k^2-amplified HBM traffic); result is already
        # in the (B, K, L) layout the kernel consumes -> no transpose pass.
        u, Ho, Wo = unfold_nchw(x.astype(jnp.bfloat16),
                                self.kernel_size, self.stride, self.padding)
        L = Ho * Wo

        basis_bytes = jnp.dtype(self.cfg["basis_dtype"]).itemsize
        l_tile = _pick_lane_tile(
            L, B, kp=self.k_pad, o=self.out_channels, basis_bytes=basis_bytes,
            vmem_budget=self.cfg["vmem_budget"], min_steps=self.cfg["min_steps"])
        Lp = _round_up(L, l_tile)

        u = jnp.pad(u, ((0, 0), (0, self.k_pad - self.K), (0, Lp - L)))

        # TODO(synk): for very large K (C_in*k*k >~ 4096) or out_channels >= 256,
        # add inner K / O grid axes with an f32 accumulator scratch; the lane
        # budget alone bounds VMEM for the shapes targeted here.
        out = _kan_conv_matmul(u, self.w_all, l_tile=l_tile,
                               basis_dtype=self.cfg["basis_dtype"],
                               vmem_limit=self.cfg["vmem_limit"])  # (B, O, Lp)
        out = out[:, :, :L]
        return out.reshape(B, self.out_channels, Ho, Wo)


# Pure-JAX f32 reference mirroring the PyTorch einsum formulation (for checking).
def reference_forward(module, x):
    u, Ho, Wo = unfold_nchw(x, module.kernel_size, module.stride, module.padding)
    res = u * jax.nn.sigmoid(u)                                         # SiLU
    acts = jnp.stack([u ** (a + 1) for a in range(ACT_SIZE)], axis=1)   # (B,A,K,L)
    t1 = jnp.einsum('bkl,ok->bokl', res, module.w_b)
    t2 = jnp.einsum('bokl,ok->bokl',
                    jnp.einsum('bakl,aok->bokl', acts, module.c), module.w_s)
    out = jnp.sum(t1 + t2, axis=2)
    return out.reshape(x.shape[0], module.out_channels, Ho, Wo)


if __name__ == "__main__":
    key = jax.random.PRNGKey(0)
    k_param, k_x = jax.random.split(key)

    B, C_in, H, W = 2, 4, 16, 16
    C_out, ksize, stride, padding = 8, 3, 1, 1

    module = Conv2dKanPallas(C_in, C_out, ksize, stride, padding, k_param)
    x = jax.random.normal(k_x, (B, C_in, H, W), jnp.float32)

    out = module(x)
    out = jax.block_until_ready(out)

    ref = jax.block_until_ready(reference_forward(module, x))
    assert out.shape == (B, C_out, 16, 16), out.shape
    max_err = float(jnp.max(jnp.abs(out - ref)))
    # bf16 U / bf16 basis+matmul operands with f32 accumulation: error O(1e-4).
    assert jnp.allclose(out, ref, atol=5e-3, rtol=5e-2), max_err

    print("KERNEL_OK")
</pallas_src>

<mosaic_0001>
module attributes {stable_mosaic.version = 11 : i64} {
  func.func @_kan_conv_kernel(%arg0: i32, %arg1: i32, %arg2: memref<1x48x256xbf16, #tpu.memory_space<vmem>>, %arg3: memref<4x8x48xbf16, #tpu.memory_space<vmem>>, %arg4: memref<1x8x256xf32, #tpu.memory_space<vmem>>) attributes {dimension_semantics = [#tpu.dimension_semantics<parallel>, #tpu.dimension_semantics<parallel>], iteration_bounds = array<i64: 2, 1>, scalar_prefetch = 0 : i64, scratch_operands = 0 : i64, tpu.core_type = #tpu.core_type<tc>, window_params = [{transform_indices = @transform_0, window_bounds = array<i64: 1, 48, 256>}, {pipeline_mode = #tpu.pipeline_mode<synchronous>, transform_indices = @transform_1, window_bounds = array<i64: 4, 8, 48>}, {transform_indices = @transform_2, window_bounds = array<i64: 1, 8, 256>}]} {
    %c0 = arith.constant 0 : index
    %c0_0 = arith.constant 0 : index
    %c0_1 = arith.constant 0 : index
    %0 = vector.load %arg2[%c0, %c0_0, %c0_1] : memref<1x48x256xbf16, #tpu.memory_space<vmem>>, vector<1x48x256xbf16>
    %1 = vector.shape_cast %0 : vector<1x48x256xbf16> to vector<48x256xbf16>
    %2 = arith.negf %1 : vector<48x256xbf16>
    %3 = math.exp %2 : vector<48x256xbf16>
    %cst = arith.constant 1.000000e+00 : bf16
    %4 = vector.broadcast %cst : bf16 to vector<48x256xbf16>
    %5 = arith.addf %4, %3 : vector<48x256xbf16>
    %6 = arith.divf %4, %5 : vector<48x256xbf16>
    %7 = arith.mulf %1, %6 : vector<48x256xbf16>
    %8 = arith.mulf %1, %1 : vector<48x256xbf16>
    %9 = arith.mulf %8, %1 : vector<48x256xbf16>
    %c0_2 = arith.constant 0 : index
    %c0_3 = arith.constant 0 : index
    %c0_4 = arith.constant 0 : index
    %10 = vector.load %arg3[%c0_2, %c0_3, %c0_4] : memref<4x8x48xbf16, #tpu.memory_space<vmem>>, vector<1x8x48xbf16>
    %11 = vector.shape_cast %10 : vector<1x8x48xbf16> to vector<8x48xbf16>
    %cst_5 = arith.constant dense<0.000000e+00> : vector<8x256xf32>
    %12 = tpu.matmul %11, %7, %cst_5 {dimension_numbers = #tpu.dot_dimension_numbers<[1], [0], [0], [1], [0, 0, 1, 1], [], []>} : vector<8x48xbf16>, vector<48x256xbf16>, vector<8x256xf32> -> vector<8x256xf32>
    %c1 = arith.constant 1 : index
    %c0_6 = arith.constant 0 : index
    %c0_7 = arith.constant 0 : index
    %13 = vector.load %arg3[%c1, %c0_6, %c0_7] : memref<4x8x48xbf16, #tpu.memory_space<vmem>>, vector<1x8x48xbf16>
    %14 = vector.shape_cast %13 : vector<1x8x48xbf16> to vector<8x48xbf16>
    %cst_8 = arith.constant dense<0.000000e+00> : vector<8x256xf32>
    %15 = tpu.matmul %14, %1, %cst_8 {dimension_numbers = #tpu.dot_dimension_numbers<[1], [0], [0], [1], [0, 0, 1, 1], [], []>} : vector<8x48xbf16>, vector<48x256xbf16>, vector<8x256xf32> -> vector<8x256xf32>
    %16 = arith.addf %12, %15 : vector<8x256xf32>
    %c2 = arith.constant 2 : index
    %c0_9 = arith.constant 0 : index
    %c0_10 = arith.constant 0 : index
    %17 = vector.load %arg3[%c2, %c0_9, %c0_10] : memref<4x8x48xbf16, #tpu.memory_space<vmem>>, vector<1x8x48xbf16>
    %18 = vector.shape_cast %17 : vector<1x8x48xbf16> to vector<8x48xbf16>
    %cst_11 = arith.constant dense<0.000000e+00> : vector<8x256xf32>
    %19 = tpu.matmul %18, %8, %cst_11 {dimension_numbers = #tpu.dot_dimension_numbers<[1], [0], [0], [1], [0, 0, 1, 1], [], []>} : vector<8x48xbf16>, vector<48x256xbf16>, vector<8x256xf32> -> vector<8x256xf32>
    %20 = arith.addf %16, %19 : vector<8x256xf32>
    %c3 = arith.constant 3 : index
    %c0_12 = arith.constant 0 : index
    %c0_13 = arith.constant 0 : index
    %21 = vector.load %arg3[%c3, %c0_12, %c0_13] : memref<4x8x48xbf16, #tpu.memory_space<vmem>>, vector<1x8x48xbf16>
    %22 = vector.shape_cast %21 : vector<1x8x48xbf16> to vector<8x48xbf16>
    %cst_14 = arith.constant dense<0.000000e+00> : vector<8x256xf32>
    %23 = tpu.matmul %22, %9, %cst_14 {dimension_numbers = #tpu.dot_dimension_numbers<[1], [0], [0], [1], [0, 0, 1, 1], [], []>} : vector<8x48xbf16>, vector<48x256xbf16>, vector<8x256xf32> -> vector<8x256xf32>
    %24 = arith.addf %20, %23 : vector<8x256xf32>
    %c0_15 = arith.constant 0 : index
    %c0_16 = arith.constant 0 : index
    %c0_17 = arith.constant 0 : index
    %25 = vector.load %arg4[%c0_15, %c0_16, %c0_17] : memref<1x8x256xf32, #tpu.memory_space<vmem>>, vector<1x8x256xf32>
    %26 = vector.shape_cast %25 : vector<1x8x256xf32> to vector<8x256xf32>
    %27 = vector.shape_cast %24 : vector<8x256xf32> to vector<1x8x256xf32>
    tpu.vector_store %arg4[%c0_15, %c0_16, %c0_17], %27 {strides = array<i32>} : memref<1x8x256xf32, #tpu.memory_space<vmem>>, vector<1x8x256xf32>,
    return
  }
  func.func @transform_0(%arg0: i32, %arg1: i32) -> (i32, i32, i32) {
    %c0_i32 = arith.constant 0 : i32
    %c0_i32_0 = arith.constant 0 : i32
    return %arg0, %c0_i32, %arg1 : i32, i32, i32
  }
  func.func @transform_1(%arg0: i32, %arg1: i32) -> (i32, i32, i32) {
    %c0_i32 = arith.constant 0 : i32
    %c0_i32_0 = arith.constant 0 : i32
    %c0_i32_1 = arith.constant 0 : i32
    %c0_i32_2 = arith.constant 0 : i32
    return %c0_i32, %c0_i32_0, %c0_i32_1 : i32, i32, i32
  }
  func.func @transform_2(%arg0: i32, %arg1: i32) -> (i32, i32, i32) {
    %c0_i32 = arith.constant 0 : i32
    %c0_i32_0 = arith.constant 0 : i32
    return %arg0, %c0_i32, %arg1 : i32, i32, i32
  }
}

</mosaic_0001>

<bundles_post_ra>
// kernel: a_call__.1
= control target key start
LH: loop header
LB: loop body
LE: loop exit
PB: predicated region body
PF: predicated region fallthrough
CT: control target
= control target key end

     0   :  { %7 = vsyncpa [#allocation3], 0  ;;  %s1299_s0 = inlined_call_operand.hbm [shape: bf16[2,48,256], index: 0, kind: input, shape index: {}]   ;;  %s1300_s1 = inlined_call_operand.hbm [shape: bf16[4,8,48], index: 1, kind: input, shape index: {}]   ;;  %s1301_s2 = inlined_call_operand.hbm [shape: f32[2,8,256], index: 2, kind: output, shape index: {}]  }
   0x1   :  { %9 = vsyncpa [#allocation3 + $0x1], 0 }
   0x2   :  { %10 = vsyncpa [#allocation6], 0 }
   0x3   :  { %11 = vsyncpa [#allocation4], 0 }
   0x4   :  { %13 = vsyncpa [#allocation4 + $0x1], 0  ;;  %s1025_s9 = smov 0   ;;  %s1027_s10 = smov 0  }
   0x5   :  { %s1029_s11 = smov 0   ;;  %s1031_s12 = smov 0  }
   0x6   :  { %s1033_s13 = smov 0   ;;  %s1035_s14 = smov 0  }
   0x7 LB: > { %s686_s15 = sadd.s32 4294967295, %s1000_s14   ;;  %s687_s16 = sadd.s32 4294967294, %s1000_s14   ;;  %s1000_s14 = sphi %s1035_s14, %s19_s14   ;;  %s996_s13 = sphi %s1033_s13, %s1324_s13   ;;  %s992_s12 = sphi %s1031_s12, %s1323_s12   ;;  %s988_s11 = sphi %s1029_s11, %s1322_s11   ;;  %s984_s10 = sphi %s1027_s10, %s1321_s10   ;;  %s980_s9 = sphi %s1025_s9, %s1320_s9  }
   0x8   : > { %p53_p0 = scmp.ne.s32.totalorder %s984_s10, %s980_s9  ;;  %p1059_p1 = scmp.eq.s32.totalorder %s686_s15, 0 }
   0x9   : > { %p1063_p2 = scmp.eq.s32.totalorder %s686_s15, 1  ;;  %p106_p3 = scmp.eq.s32.totalorder %s687_s16, 1 }
   0xa   : > { %s1306_s17 = scalar_select %p1059_p1, 1, 0 }
   0xb   : > { %s1307_s18 = scalar_select %p1063_p2, 1, 0 }
   0xc   : > { %p1069_p4 = por %p1059_p1, %p53_p0  ;;  %p688_p5 = scmp.ge.s32.totalorder %s1000_s14, 1 }
   0xd   : > { %p1074_p6 = por %p106_p3, %p53_p0  ;;  %p113_p7 = scmp.lt.s32.totalorder %s1000_s14, 3 }
   0xe   : > { %s1308_s19 = scalar_select %p1069_p4, 1, 0 }
   0xf   : > { %s1309_s20 = scalar_select %p1074_p6, 1, 0 }
  0x10   : > { %p1079_p8 = pnand %p688_p5, %p113_p7  ;;  %s1002_s22 = smov [#allocation5]  }
  0x11   : > { %s125_s23 = sshll.u32 %s1002_s22, 4  ;;  %s31_s25 = sadd.s32 1, %s996_s13  ;;  %s126_s23 = int_to_ptr.vmem [resolvable:$true] %s125_s23 }
  0x12   : > { %s1310_s21 = scalar_select %p1079_p8, 1, 0 }
  0x13   : > { %p756_p9 = pneg %p1079_p8  ;;  %s856_s28 = scalar_lea.hbm %s1300_s1, 256 }
  0x14   : > { %p857_p12 = scmp.ne.s32.totalorder %s1300_s1, %s856_s28  ;;  %p863_p5 = scmp.lt.u32.totalorder %s856_s28, %s1300_s1 }
  0x15   : > { %p1088_p11 = pnand %p756_p9, %p1059_p1 }
  0x17   : > { %p858_p13 = pneg %p1088_p11 }
  0x19   : > { %p859_p0 = pnand %p858_p13, %p857_p12 }
  0x1b   : > { %p860_p3 = pneg %p859_p0 }
  0x1d   : > { %p865_p7 = pnand %p863_p5, %p860_p3 }
  0x1f   : > { %868 = shalt.err (!%p865_p7)
}
  0x20   : > { %s869_s5 = scalar_lea.vmem %s126_s23, 256  ;;  %p877_p1 = scmp.lt.s32.totalorder %s126_s23, %s126_s23 }
  0x21   : > { %p870_p9 = scmp.ne.s32.totalorder %s126_s23, %s869_s5  ;;  %p878_p4 = scmp.lt.s32.totalorder %s869_s5, %s869_s5 }
  0x23   : > { %p872_p10 = pnand %p870_p9, %p858_p13  ;;  %p879_p8 = por %p878_p4, %p877_p1 }
  0x25   : > { %p873_p6 = pneg %p872_p10 }
  0x27   : > { %p880_p2 = pnand %p879_p8, %p873_p6 }
  0x29   : > { %883 = shalt.err (!%p880_p2)
}
  0x2a   : > { %s1003_s6 = smov 64   ;;  %s1004_s7 = smov 4  }
  0x2b   : > { %759 = dma.hbm_to_vmem [thread:$0]  (!%p1088_p11), %s1300_s1, 256, %s126_s23, [#allocation6], %s1003_s6, %s1003_s6, %s1004_s7  }
  0x2c   : > { %p33_p1 = scmp.ge.s32.totalorder %s31_s25, 2  ;;  %s40_s16 = sadd.s32 1, %s988_s11 }
  0x2d   : > { %p47_p2 = scmp.ne.s32.totalorder %s988_s11, %s984_s10  ;;  %p48_p4 = scmp.eq.s32.totalorder %s1000_s14, 0 }
  0x2e   : > { %s1326_s25 = smov (%p33_p1, %s31_s25), 0  ;;  %p1312_p8 = scmp.ne.s32.totalorder %s1307_s18, 0 }
  0x2f   : > { %p49_p6 = por %p48_p4, %p47_p2  ;;  %s35_s26 = ssub.s32 %s996_s13, %s1326_s25 }
  0x30   : > { %p1117_p10 = por %p1312_p8, %p47_p2  ;;  %p769_p12 = scmp.lt.s32.totalorder %s1000_s14, 2 }
  0x31   : > { %p38_p13 = scmp.eq.s32.totalorder %s35_s26, 0  ;;  %s139_s24 = sand.u32 1, %s988_s11  }
  0x32   : > { %s745_s27 = smul.u32 48, %s139_s24  ;;  %p1129_p11 = pnand %p769_p12, %p49_p6 }
  0x33   : > { %s1126_s28 = scalar_select %p38_p13, %s988_s11, %s40_s16  }
  0x34   : > { %s746_s23 = smul.u32 768, %s996_s13  ;;  %s143_s29 = scalar_lea.vmem [#allocation2], %s745_s27 }
  0x35   : > { %s152_s30 = sshll.u32 %s143_s29, 4  ;;  %s1140_s6 = scalar_lea.sflag [#allocation3], %s139_s24  ;;  %s1138_s30 = int_to_ptr.vmem [resolvable:$true] %s152_s30 }
  0x36   : > { %s1136_s5 = scalar_lea.hbm %s1299_s0, %s746_s23  ;;  %p886_p3 = pneg %p1129_p11 }
  0x37   : > { %s884_s7 = scalar_lea.hbm %s1136_s5, 768  ;;  %s889_s16 = scalar_lea.hbm %s1299_s0, 1536 }
  0x38   : > { %p885_p0 = scmp.ne.s32.totalorder %s1136_s5, %s884_s7  ;;  %p890_p9 = scmp.lt.u32.totalorder %s1136_s5, %s1299_s0 }
  0x39   : > { %p891_p1 = scmp.lt.u32.totalorder %s889_s16, %s884_s7  ;;  %p893_p4 = scmp.lt.u32.totalorder %s884_s7, %s1136_s5 }
  0x3a   : > { %p887_p5 = pnand %p886_p3, %p885_p0 }
  0x3b   : > { %p892_p2 = por %p891_p1, %p890_p9 }
  0x3c   : > { %p888_p7 = pneg %p887_p5 }
  0x3d   : > { %p894_p6 = por %p893_p4, %p892_p2 }
  0x3f   : > { %p895_p8 = pnand %p894_p6, %p888_p7 }
  0x41   : > { %898 = shalt.err (!%p895_p8)
}
  0x42   : > { %s899_s24 = scalar_lea.vmem %s1138_s30, 768  ;;  %s1005_s23 = smov [#allocation2]  }
  0x43   : > { %p900_p12 = scmp.ne.s32.totalorder %s1138_s30, %s899_s24  ;;  %s904_s29 = sshll.u32 %s1005_s23, 4  ;;  %s905_s29 = int_to_ptr.vmem [resolvable:$false] %s904_s29 }
  0x44   : > { %s906_s4 = scalar_lea.vmem %s905_s29, 1536  ;;  %p907_p5 = scmp.lt.s32.totalorder %s1138_s30, %s905_s29 }
  0x45   : > { %p902_p13 = pnand %p900_p12, %p886_p3  ;;  %p908_p9 = scmp.lt.s32.totalorder %s906_s4, %s899_s24 }
  0x47   : > { %p903_p0 = pneg %p902_p13  ;;  %p909_p1 = por %p908_p9, %p907_p5 }
  0x49   : > { %p910_p2 = pnand %p909_p1, %p903_p0 }
  0x4b   : > { %913 = shalt.err (!%p910_p2)
}
  0x4c   : > { %s1006_s18 = smov 128   ;;  %s1007_s7 = smov 8  }
  0x4d   : > { %763 = dma.hbm_to_vmem [thread:$0]  (!%p1129_p11), %s1136_s5, 768, %s1138_s30, %s1140_s6, %s1006_s18, %s1006_s18, %s1007_s7  }
  0x4e   : > { %p1315_p3 = scmp.ne.s32.totalorder %s1310_s21, 0 }
  0x4f   : > { %s1171_s8 = sand.u32 (!%p1315_p3), 1, %s984_s10   ;;  %p1316_p7 = scmp.ne.s32.totalorder (!%p1315_p3), %s1308_s19, 0 }
  0x50   : > { %164 = sbr.rel (%p1315_p3) target bundleno = 372 (0x174), region = 28  ;;  %s167_s16 = scalar_lea.sflag (!%p1315_p3), [#allocation3], %s1171_s8 }
  0x51   : > { %s747_s15 = smul.u32 (!%p1315_p3), 48, %s1171_s8 }
  0x53   : > { %s170_s26 = scalar_lea.vmem (!%p1315_p3), [#allocation2], %s747_s15 }
  0x57   : > { %967 = dma.done.wait (%p1316_p7), %s167_s16, 768  }
  0x58   : > { %969 = vsyncadd (%p1316_p7), %s167_s16, 4294966528  ;;  %p1317_p4 = scmp.ne.s32.totalorder %s1306_s17, 0 }
  0x5a   : > { %971 = dma.done.wait (%p1317_p4), [#allocation6], 256  }
  0x5b   : > { %973 = vsyncadd (%p1317_p4), [#allocation6], 4294967040  ;;  %v1008_v0 = vmov 0   ;;  %v1185_v1 = vld [vmem:[%s170_s26] sm:$0xff]  ;;  %v1187_v2 = vld [vmem:[%s170_s26 + $0x8] sm:$0xff]  ;;  %vm298_vm0 = vcmask 392192  }
  0x5c   : > { %484 = vmatprep.mubr.bf16.mxu0 %v1008_v0  ;;  %334 = vmatprep.mubr.bf16.mxu1 %v1008_v0  ;;  %v1189_v3 = vld [vmem:[%s170_s26 + $0x10] sm:$0xff]  ;;  %v253_v4 = vmul.bf16 %v1185_v1, %v1185_v1  ;;  %v254_v5 = vmul.bf16 %v1187_v2, %v1187_v2  ;;  %v1195_v6 = vld [vmem:[%s170_s26 + $0x18] sm:$0xff]  ;;  %v702_v8 = vcombine.high %v1185_v1, %v1187_v2  ;;  %v1203_v10 = vld [vmem:[%s170_s26 + $0x20] sm:$0xff]  ;;  %v695_v25 = vmul.bf16 3216621497, %v1185_v1  ;;  %s694_s17 = sshll.u32 %s1171_s8, 4 }
  0x5d   : > { %v255_v7 = vmul.bf16 %v1189_v3, %v1189_v3  ;;  %v256_v9 = vmul.bf16 %v1195_v6, %v1195_v6  ;;  %v1205_v11 = vld [vmem:[%s170_s26 + $0x28] sm:$0xff]  ;;  %v701_v12 = vcombine.low %v1185_v1, %v1187_v2  ;;  %v257_v15 = vmul.bf16 %v1203_v10, %v1203_v10  ;;  %v267_v36 = vld [vmem:[#allocation5 + $0x4] sm:$0xf]  ;;  %s734_s19 = sshll.u32 %s992_s12, 8  ;;  %s194_s21 = scalar_lea.vmem [#allocation7], %s694_s17 }
  0x5e   : > { %v716_v13 = vcombine.high %v253_v4, %v254_v5  ;;  %v715_v14 = vcombine.low %v253_v4, %v254_v5  ;;  %v258_v16 = vmul.bf16 %v1205_v11, %v1205_v11  ;;  %302 = vmatprep.subr.bf16.mxu1 %v702_v8  ;;  %v259_v18 = vmul.bf16 %v253_v4, %v1185_v1  ;;  %v418_v37 = vld [vmem:[#allocation5 + $0x8] sm:$0xf]  ;;  %v496_v55 = vld [vmem:[#allocation5 + $0xc] sm:$0xf]  ;;  %s592_s30 = sshll.u32 %s194_s21, 4  ;;  %s1250_s6 = scalar_lea.hbm %s1301_s2, %s734_s19  ;;  %s1252_s30 = int_to_ptr.vmem [resolvable:$true] %s592_s30 }
  0x5f   : > { %v718_v17 = vcombine.high %v255_v7, %v256_v9  ;;  %303 = vmatpush1.bf16.msra.mxu1 %v701_v12  ;;  %v717_v19 = vcombine.low %v255_v7, %v256_v9  ;;  %v260_v20 = vmul.bf16 %v254_v5, %v1187_v2  ;;  %v704_v21 = vcombine.high %v1189_v3, %v1195_v6  ;;  %s576_s12 = scalar_lea.sflag [#allocation4], %s1171_s8  ;;  %s914_s27 = scalar_lea.vmem %s1252_s30, 256 }
  0x60   : > { %452 = vmatprep.subr.bf16.mxu0 %v716_v13  ;;  %v703_v22 = vcombine.low %v1189_v3, %v1195_v6  ;;  %v720_v23 = vcombine.high %v257_v15, %v258_v16  ;;  %v706_v24 = vcombine.high %v1203_v10, %v1205_v11  ;;  %v696_v26 = vmul.bf16 3216621497, %v1187_v2  ;;  %p915_p11 = scmp.ne.s32.totalorder %s1252_s30, %s914_s27  ;;  %s1009_s24 = smov [#allocation7]  }
  0x61   : > { %453 = vmatpush1.bf16.msra.mxu0 %v715_v14  ;;  %304 = vmatprep.subr.bf16.mxu1 %v704_v21  ;;  %v705_v27 = vcombine.low %v1203_v10, %v1205_v11  ;;  %v697_v28 = vmul.bf16 3216621497, %v1189_v3  ;;  %v698_v29 = vmul.bf16 3216621497, %v1195_v6  ;;  %v719_v30 = vcombine.low %v257_v15, %v258_v16  ;;  %v265_v21 = vld [vmem:[#allocation5] sm:$0xf] }
  0x62   : > { %454 = vmatprep.subr.bf16.mxu0 %v718_v17  ;;  %v723_v31 = vcombine.high %v259_v18, %v260_v20  ;;  %832 = vpow.bf16 %v695_v25  ;;  %v699_v32 = vmul.bf16 3216621497, %v1203_v10  ;;  %v261_v33 = vmul.bf16 %v255_v7, %v1189_v3  ;;  %p916_p6 = pnand %p915_p11, %p1117_p10  ;;  %s918_s23 = sshll.u32 %s1009_s24, 4  ;;  %s919_s23 = int_to_ptr.vmem [resolvable:$false] %s918_s23 }
  0x63   : > { %305 = vmatpush1.bf16.msra.mxu1 %v703_v22  ;;  %v262_v34 = vmul.bf16 %v256_v9, %v1195_v6  ;;  %834 = vpow.bf16 %v696_v26  ;;  %v700_v35 = vmul.bf16 3216621497, %v1205_v11  ;;  %v722_v38 = vcombine.low %v259_v18, %v260_v20  ;;  %s920_s29 = scalar_lea.vmem %s919_s23, 512  ;;  %p921_p12 = scmp.lt.s32.totalorder %s1252_s30, %s919_s23 }
  0x64   : > { %306 = vmatprep.subr.bf16.mxu1 %v706_v24  ;;  %836 = vpow.bf16 %v697_v28  ;;  %v263_v40 = vmul.bf16 %v257_v15, %v1203_v10  ;;  %v264_v41 = vmul.bf16 %v258_v16, %v1205_v11  ;;  %p917_p8 = pneg %p916_p6  ;;  %p922_p13 = scmp.lt.s32.totalorder %s920_s29, %s914_s27 }
  0x65   : > { %455 = vmatpush1.bf16.msra.mxu0 %v717_v19  ;;  %838 = vpow.bf16 %v698_v29  ;;  %v725_v39 = vcombine.high %v261_v33, %v262_v34  ;;  %v724_v42 = vcombine.low %v261_v33, %v262_v34 }
  0x66   : > { %456 = vmatprep.subr.bf16.mxu0 %v720_v23  ;;  %840 = vpow.bf16 %v699_v32  ;;  %v727_v43 = vcombine.high %v263_v40, %v264_v41  ;;  %v726_v46 = vcombine.low %v263_v40, %v264_v41  ;;  %p923_p0 = por %p922_p13, %p921_p12 }
  0x67   : > { %307 = vmatpush1.bf16.msra.mxu1 %v705_v27  ;;  %842 = vpow.bf16 %v700_v35 }
  0x68   : > { %p924_p5 = pnand %p923_p0, %p917_p8 }
  0x69   : > { %457 = vmatpush1.bf16.msra.mxu0 %v719_v30 }
  0x6a   : > { %530 = vmatprep.subr.bf16.mxu0 %v723_v31  ;;  %707 = vmatmul.mubr.msk.bf16.vlgmr.msra.gmra.mrb[0].mxu1 %vm298_vm0, %v267_v36 }
  0x6b   : > { %408 = vmatprep.mubr.bf16.mxu1 %v1008_v0 }
  0x6c   : > { %721 = vmatmul.mubr.msk.bf16.vlgmr.msra.gmra.mrb[0].mxu0 %vm298_vm0, %v418_v37 }
  0x6d   : > { %531 = vmatpush1.bf16.msra.mxu0 %v722_v38  ;;  %562 = vmatprep.mubr.bf16.mxu0 %v1008_v0  ;;  %v833_v44 = vpop.eup %832 }
  0x6e   : > { %532 = vmatprep.subr.bf16.mxu0 %v725_v39  ;;  %v835_v45 = vpop.eup %834  ;;  %v229_v47 = vadd.bf16 1065369472, %v833_v44 }
  0x6f   : > { %v837_v48 = vpop.eup %836  ;;  %v230_v49 = vadd.bf16 1065369472, %v835_v45 }
  0x70   : > { %v839_v50 = vpop.eup %838  ;;  %844 = vrcp.bf16 %v229_v47  ;;  %v231_v51 = vadd.bf16 1065369472, %v837_v48 }
  0x71   : > { %533 = vmatpush1.bf16.msra.mxu0 %v724_v42  ;;  %v841_v52 = vpop.eup %840  ;;  %846 = vrcp.bf16 %v230_v49  ;;  %v232_v53 = vadd.bf16 1065369472, %v839_v50 }
  0x72   : > { %534 = vmatprep.subr.bf16.mxu0 %v727_v43  ;;  %v843_v54 = vpop.eup %842  ;;  %848 = vrcp.bf16 %v231_v51  ;;  %v233_v56 = vadd.bf16 1065369472, %v841_v52 }
  0x73   : > { %850 = vrcp.bf16 %v232_v53  ;;  %v234_v57 = vadd.bf16 1065369472, %v843_v54 }
  0x74   : > { %852 = vrcp.bf16 %v233_v56 }
  0x75   : > { %535 = vmatpush1.bf16.msra.mxu0 %v726_v46  ;;  %854 = vrcp.bf16 %v234_v57 }
  0x78   : > { %728 = vmatmul.mubr.msk.bf16.vlgmr.msra.gmra.mrb[0].mxu0 %vm298_vm0, %v496_v55 }
  0x7b   : > { %v845_v58 = vpop.eup %844 }
  0x7c   : > { %v847_v59 = vpop.eup %846  ;;  %v236_v60 = vmul.bf16 1065369472, %v845_v58 }
  0x7d   : > { %v849_v61 = vpop.eup %848  ;;  %v238_v62 = vmul.bf16 1065369472, %v847_v59 }
  0x7e   : > { %v851_v63 = vpop.eup %850  ;;  %v247_v0 = vmul.bf16 %v236_v60, %v1185_v1  ;;  %v240_v4 = vmul.bf16 1065369472, %v849_v61 }
  0x7f   : > { %v853_v5 = vpop.eup %852  ;;  %v248_v7 = vmul.bf16 %v238_v62, %v1187_v2  ;;  %v242_v8 = vmul.bf16 1065369472, %v851_v63 }
  0x80   : > { %v855_v9 = vpop.eup %854  ;;  %v249_v12 = vmul.bf16 %v240_v4, %v1189_v3  ;;  %v244_v13 = vmul.bf16 1065369472, %v853_v5 }
  0x81   : > { %v709_v14 = vcombine.high %v247_v0, %v248_v7  ;;  %v708_v15 = vcombine.low %v247_v0, %v248_v7  ;;  %v250_v16 = vmul.bf16 %v242_v8, %v1195_v6  ;;  %v246_v17 = vmul.bf16 1065369472, %v855_v9 }
  0x82   : > { %v251_v18 = vmul.bf16 %v244_v13, %v1203_v10 }
  0x83   : > { %376 = vmatprep.subr.bf16.mxu1 %v709_v14  ;;  %v711_v19 = vcombine.high %v249_v12, %v250_v16  ;;  %v252_v1 = vmul.bf16 %v246_v17, %v1205_v11  ;;  %v710_v2 = vcombine.low %v249_v12, %v250_v16 }
  0x84   : > { %377 = vmatpush1.bf16.msra.mxu1 %v708_v15 }
  0x85   : > { %378 = vmatprep.subr.bf16.mxu1 %v711_v19  ;;  %v713_v20 = vcombine.high %v251_v18, %v252_v1  ;;  %v712_v3 = vcombine.low %v251_v18, %v252_v1 }
  0x88   : > { %379 = vmatpush1.bf16.msra.mxu1 %v710_v2 }
  0x89   : > { %380 = vmatprep.subr.bf16.mxu1 %v713_v20 }
  0x8c   : > { %381 = vmatpush1.bf16.msra.mxu1 %v712_v3 }
  0x8f   : > { %714 = vmatmul.mubr.msk.bf16.vlgmr.msra.gmra.mrb[0].mxu1 %vm298_vm0, %v265_v21 }
 0x14b   : > { %v564_v6 = vpop.f32.mrb[0].mxu0 }
 0x14c   : > { %v566_v22 = vpop.f32.mrb[1].mxu0 }
 0x14d   : > { %v568_v10 = vpop.f32.mrb[2].mxu0 }
 0x14e   : > { %v569_v23 = vpop.f32.mrb[3].mxu0 }
 0x162   : > { %v410_v11 = vpop.f32.mrb[0].mxu1 }
 0x163   : > { %v735_v24 = vadd.f32 %v564_v6, %v410_v11  ;;  %v412_v25 = vpop.f32.mrb[1].mxu1 }
 0x164   : > { %v736_v26 = vadd.f32 %v566_v22, %v412_v25  ;;  %v414_v27 = vpop.f32.mrb[2].mxu1 }
 0x165   : > { %573 = vst [vmem:[%s194_s21] sm:$0xff] %v735_v24  ;;  %v415_v28 = vpop.f32.mrb[3].mxu1 }
 0x166   : > { %574 = vst [vmem:[%s194_s21 + $0x8] sm:$0xff] %v736_v26 }
 0x167   : > { %927 = shalt.err (!%p924_p5)
}
 0x168   : > { %s928_s4 = scalar_lea.hbm %s1250_s6, 256  ;;  %s932_s8 = scalar_lea.hbm %s1301_s2, 512 }
 0x169   : > { %p929_p9 = scmp.ne.s32.totalorder %s1250_s6, %s928_s4  ;;  %p933_p3 = scmp.lt.u32.totalorder %s1250_s6, %s1301_s2 }
 0x16a   : > { %p934_p7 = scmp.lt.u32.totalorder %s932_s8, %s928_s4  ;;  %p936_p11 = scmp.lt.u32.totalorder %s928_s4, %s1250_s6 }
 0x16b   : > { %p930_p1 = pnand %p929_p9, %p1117_p10 }
 0x16c   : > { %p935_p4 = por %p934_p7, %p933_p3 }
 0x16d   : > { %p931_p2 = pneg %p930_p1 }
 0x16e   : > { %p937_p6 = por %p936_p11, %p935_p4 }
 0x170   : > { %p938_p8 = pnand %p937_p6, %p931_p2 }
 0x172   : > { %941 = shalt.err (!%p938_p8)
}
 0x173   : > { %754 = dma.vmem_to_hbm [thread:$0]  (%p1117_p10), %s1252_s30, 256, %s1250_s6, %s576_s12  }
 0x174 PF: > { %s604_s26 = sand.u32 1, %s980_s9   ;;  %p1318_p12 = scmp.ne.s32.totalorder %s1309_s20, 0 }
 0x175   : > { %p1319_p13 = scmp.ge.s32.totalorder %s1000_s14, 2  ;;  %s605_s17 = scalar_lea.sflag [#allocation4], %s604_s26 }
 0x177   : > { %p765_p0 = pnand %p1319_p13, %p1318_p12 }
 0x179   : > { %975 = dma.done.wait (!%p765_p0), %s605_s17, 256  }
 0x17a   : > { %977 = vsyncadd (!%p765_p0), %s605_s17, 4294967040  ;;  %s19_s14 = sadd.s32 1, %s1000_s14   ;;  %s1320_s9 = smov %s984_s10 }
 0x17b   : > { %p16_p5 = scmp.ge.s32.totalorder %s19_s14, 4   ;;  %s1321_s10 = smov %s988_s11 }
 0x17c   : > { %s1322_s11 = smov %s1126_s28  ;;  %s1323_s12 = smov %s996_s13 }
 0x17d   : > { %s1324_s13 = smov %s1326_s25  ;;  %18 = sbr.rel (!%p16_p5) target bundleno = 7 (0x7), region = 80 }
 0x184   :  { %610 = vsyncpa [#allocation3], 1 }
 0x185   :  { %612 = vsyncpa [#allocation3 + $0x1], 1 }
 0x186   :  { %613 = vsyncpa [#allocation6], 1 }
 0x187   :  { %614 = vsyncpa [#allocation4], 1 }
 0x188   :  { %616 = vsyncpa [#allocation4 + $0x1], 1 }

</bundles_post_ra>
